<compile_context>
chip_gen: v7x
topology: tpu7x:2x2x1
jax: 0.10.0
libtpu: 0.0.40
codegen_flags: <defaults>
</compile_context>

<pallas_src>
import jax
import jax.numpy as jnp
from jax.experimental import pallas as pl
from jax.experimental.pallas import tpu as pltpu

_MAX_DMA_CHUNKS = 8              # issue up to 8 concurrent DMAs for large copies
_MIN_CHUNK_BYTES = 1 << 20       # do not bother splitting below ~1 MiB / chunk


def _num_chunks(leading, nbytes):
    """How many concurrent DMA chunks to issue along the leading dim."""
    if leading <= 1:
        return 1
    by_size = max(1, nbytes // _MIN_CHUNK_BYTES)
    return int(min(_MAX_DMA_CHUNKS, leading, by_size))


def _make_hbm_copy_kernel(bounds):
    """Kernel: chunked HBM->HBM DMA copy with static chunk bounds."""
    n = len(bounds) - 1

    def kernel(x_hbm, o_hbm, sem):
        copies = []
        if n == 1:
            cp = pltpu.make_async_copy(x_hbm, o_hbm, sem.at[0])
            cp.start()
            copies.append(cp)
        else:
            for i in range(n):
                lo = bounds[i]
                sz = bounds[i + 1] - bounds[i]
                cp = pltpu.make_async_copy(
                    x_hbm.at[pl.ds(lo, sz)],
                    o_hbm.at[pl.ds(lo, sz)],
                    sem.at[i],
                )
                cp.start()
                copies.append(cp)
        for cp in copies:
            cp.wait()

    return kernel


def _pallas_identity_copy(x):
    """Materialized identity copy of `x` via direct HBM->HBM DMA (no VMEM staging)."""
    if x.size == 0:
        return x

    nbytes = int(x.size) * jnp.dtype(x.dtype).itemsize
    leading = x.shape[0] if x.ndim >= 1 else 1
    n_chunks = _num_chunks(leading, nbytes)

    # Static, near-equal chunk boundaries along the leading dimension.
    base = leading // n_chunks
    rem = leading % n_chunks
    bounds = [0]
    for i in range(n_chunks):
        bounds.append(bounds[-1] + base + (1 if i < rem else 0))

    kernel = _make_hbm_copy_kernel(bounds)

    return pl.pallas_call(
        kernel,
        out_shape=jax.ShapeDtypeStruct(x.shape, x.dtype),
        in_specs=[pl.BlockSpec(memory_space=pl.ANY)],
        out_specs=pl.BlockSpec(memory_space=pl.ANY),
        scratch_shapes=[pltpu.SemaphoreType.DMA((n_chunks,))],
        cost_estimate=pl.CostEstimate(
            flops=0, transcendentals=0, bytes_accessed=2 * nbytes),
    )(x)


class MiddleLayer:
    """JAX/Pallas port of the PyTorch MiddleLayer.

    forward(examples): examples['middle_feature'] = examples['encode_feature']

    Default path is a pure re-reference (zero HBM traffic, identical to the
    PyTorch aliasing semantics).  Set materialize_copy=True to force a
    materialized copy through the direct HBM->HBM DMA kernel.
    """

    def __init__(self, input_size=None, output_size=None, num=1,
                 materialize_copy=False):
        self.num = num                    # no parameters; kept for interface parity
        self.materialize_copy = materialize_copy

    def forward(self, examples):
        mid_feature = examples["encode_feature"]
        if self.materialize_copy:
            mid_feature = _pallas_identity_copy(mid_feature)
        out = dict(examples)
        out.update({"middle_feature": mid_feature})
        return out

    __call__ = forward


def _roundtrip_check(shape, key, dtype=jnp.float32):
    x = jax.random.normal(key, shape, dtype=jnp.float32).astype(dtype)
    y = jax.block_until_ready(_pallas_identity_copy(x))
    assert y.shape == x.shape
    assert y.dtype == x.dtype
    assert bool(jnp.all(y == x))


if __name__ == "__main__":
    key = jax.random.PRNGKey(0)
    # Small encoder-like feature map, NCHW: batch=2, channels=4, spatial=16x16.
    encode_feature = jax.random.normal(key, (2, 4, 16, 16), dtype=jnp.float32)
    examples = {"encode_feature": encode_feature}

    # Default (recommended) path: pure re-reference, zero HBM traffic.
    out_alias = MiddleLayer(num=1)(examples)
    assert out_alias["middle_feature"] is encode_feature
    assert out_alias["encode_feature"] is encode_feature

    # Materialized-copy path: runs the HBM->HBM DMA copy kernel once.
    out_copy = MiddleLayer(num=1, materialize_copy=True)(examples)
    mid = jax.block_until_ready(out_copy["middle_feature"])
    assert out_copy["encode_feature"] is encode_feature
    assert mid.shape == encode_feature.shape
    assert mid.dtype == encode_feature.dtype
    assert bool(jnp.all(mid == encode_feature))

    # Extra kernel robustness checks:
    k1, k2, k3 = jax.random.split(key, 3)
    _roundtrip_check((4, 3, 40, 50), k1)                    # ragged, no padding needed
    _roundtrip_check((16, 16, 64, 64), k2)                  # 4 MiB -> multi-chunk DMA
    _roundtrip_check((8, 128, 33), k3, dtype=jnp.bfloat16)  # packed dtype, odd trailing dim

    print("KERNEL_OK")
</pallas_src>

<mosaic_0001>
module attributes {stable_mosaic.version = 11 : i64} {
  func.func @kernel(%arg0: memref<2x4x16x16xf32, #tpu.memory_space<any>>, %arg1: memref<2x4x16x16xf32, #tpu.memory_space<any>>, %arg2: memref<1x!tpu.dma_semaphore, #tpu.memory_space<semaphore_mem>>) attributes {dimension_semantics = [], scalar_prefetch = 0 : i64, scratch_operands = 1 : i64, tpu.core_type = #tpu.core_type<tc>} {
    %c0_i32 = arith.constant 0 : i32
    %0 = tpu.memref_slice %arg2[%c0_i32] : memref<1x!tpu.dma_semaphore, #tpu.memory_space<semaphore_mem>> -> memref<1x!tpu.dma_semaphore, #tpu.memory_space<semaphore_mem>>
    %1 = tpu.memref_squeeze %0 : memref<1x!tpu.dma_semaphore, #tpu.memory_space<semaphore_mem>> -> memref<!tpu.dma_semaphore, #tpu.memory_space<semaphore_mem>>
    tpu.enqueue_dma source(%arg0 : memref<2x4x16x16xf32, #tpu.memory_space<any>>) target(%arg1 : memref<2x4x16x16xf32, #tpu.memory_space<any>>) target_semaphore(%1 : memref<!tpu.dma_semaphore, #tpu.memory_space<semaphore_mem>>)
    %c0_i32_0 = arith.constant 0 : i32
    %2 = tpu.memref_slice %arg2[%c0_i32_0] : memref<1x!tpu.dma_semaphore, #tpu.memory_space<semaphore_mem>> -> memref<1x!tpu.dma_semaphore, #tpu.memory_space<semaphore_mem>>
    %3 = tpu.memref_squeeze %2 : memref<1x!tpu.dma_semaphore, #tpu.memory_space<semaphore_mem>> -> memref<!tpu.dma_semaphore, #tpu.memory_space<semaphore_mem>>
    tpu.wait_dma2 semaphore(%3 : memref<!tpu.dma_semaphore, #tpu.memory_space<semaphore_mem>>) src(%arg0 : memref<2x4x16x16xf32, #tpu.memory_space<any>>) dst(%arg1 : memref<2x4x16x16xf32, #tpu.memory_space<any>>)
    return
  }
}

</mosaic_0001>

<bundles_post_ra>
// kernel: tpu_custom_call.1
= control target key start
LH: loop header
LB: loop body
LE: loop exit
PB: predicated region body
PF: predicated region fallthrough
CT: control target
= control target key end

     0   :  { %s36_s6 = smov [#allocation2]   ;;  %s37_s7 = smov [#allocation3]   ;;  %s55_s0 = inlined_call_operand.hbm [shape: f32[2,4,16,16], index: 0, kind: input, shape index: {}]   ;;  %s56_s1 = inlined_call_operand.hbm [shape: f32[2,4,16,16], index: 1, kind: output, shape index: {}]  }
   0x1   :  { %s38_s8 = smov 0  }
   0x2   :  { %18 = dma.general %s55_s0, 2048, %s56_s1, %s36_s6, %s37_s7, [#allocation4], %s38_s8, 0  }
   0x3   :  { %34 = dma.done.wait [#allocation2], 2048 }
   0x4   :  { %35 = vsyncadd [#allocation2], 4294965248 }
   0x5   :  { %24 = vsyncmov [#allocation2] }
   0x8   :  { %s25_s13 = vpop.sfrf %24 }
   0x9   :  { %p30_p0 = scmp.ne.s32.totalorder %s25_s13, 0 }
   0xb   :  { %29 = shalt.err (%p30_p0)  }

</bundles_post_ra>
